<compile_context>
chip_gen: v7x
topology: tpu7x:2x2x1
jax: 0.10.0
libtpu: 0.0.40
codegen_flags: <defaults>
</compile_context>

<pallas_src>
import functools

import jax
import jax.numpy as jnp
from jax.experimental import pallas as pl
from jax.experimental.pallas import tpu as pltpu

_LANE = 128      # lane width  (last-dim granularity)
_SUBLANE = 8     # sublane width (second-to-last-dim granularity, f32)


def _round_up(n, m):
    return ((n + m - 1) // m) * m


def _fused_mlp_kernel(*refs, num_layers):
    """refs = (x_ref, w0_ref, b0_ref, w1_ref, b1_ref, ..., o_ref).

    Computes h = relu(h @ w_l + b_l) for every layer; the running activation
    never leaves VMEM/vregs.  Matmuls run on the MXU with bf16 inputs and f32
    accumulation; bias-add and ReLU are f32 on the VPU.
    """
    x_ref = refs[0]
    o_ref = refs[-1]
    h_f32 = x_ref[...]                                # (TB, Din) f32
    h_bf = h_f32.astype(jnp.bfloat16)                 # MXU-native input
    for l in range(num_layers):                       # static unroll
        w_ref = refs[1 + 2 * l]                       # (Kin, Dout_pad) bf16
        b_ref = refs[2 + 2 * l]                       # (1, Dout_pad)  f32
        y = jnp.dot(h_bf, w_ref[...], preferred_element_type=jnp.float32)
        h_f32 = jnp.maximum(y + b_ref[...], 0.0)      # f32 bias + ReLU
        h_bf = h_f32.astype(jnp.bfloat16)             # feed next MXU in bf16
    o_ref[...] = h_f32.astype(o_ref.dtype)


def init_fc_body_params(key, state_dim, hidden_units=(64, 64), w_scale=1.0):
    """Replicates layer_init: orthogonal weights (scaled), zero biases.

    Weights are stored transposed to (in, out) (nn.Linear stores (out, in))
    and in bf16.  Every layer's *output* dim is zero-padded to a multiple of
    128; layer 0's *input* dim is kept at its true size (so x never needs
    wrapper-side padding) and inner input dims match the previous layer's
    padded output.  Biases are zeros (f32), padded to the same output width.
    """
    dims = (state_dim,) + tuple(hidden_units)
    orth = jax.nn.initializers.orthogonal()
    layers = []
    in_pad = dims[0]                        # layer-0 input stays unpadded
    for din, dout in zip(dims[:-1], dims[1:]):
        key, sub = jax.random.split(key)
        w_torch = orth(sub, (dout, din), jnp.float32) * w_scale   # (out, in)
        w = jnp.transpose(w_torch)                                # (in, out)
        dout_pad = _round_up(dout, _LANE)
        w_pad = jnp.zeros((in_pad, dout_pad), jnp.float32)
        w_pad = w_pad.at[:din, :dout].set(w).astype(jnp.bfloat16)
        b_pad = jnp.zeros((1, dout_pad), jnp.float32)             # bias == 0
        layers.append((w_pad, b_pad))
        in_pad = dout_pad
    return {"layers": layers, "dims": dims}


def _choose_batch_tile(batch):
    """(tile_rows, n_tiles): single full-array tile for small/ragged batches;
    otherwise an even number of tiles (<= 1024 rows each) so both v7x
    TensorCores get work while each grid step amortizes its ~0.35us cost."""
    if batch % _SUBLANE != 0 or batch < 256:
        return batch, 1
    n = 2
    while n <= batch // _SUBLANE:
        tb = batch // n
        if batch % n == 0 and tb % _SUBLANE == 0 and tb <= 1024:
            return tb, n
        n += 2
    return batch, 1


def fc_body_forward(x, params):
    """Forward pass of FCBody: x -> relu(linear(x)) for each layer (fused)."""
    layers = params["layers"]
    dims = params["dims"]
    num_layers = len(layers)

    x = x.astype(jnp.float32)
    b_true, din = x.shape
    dout_true = dims[-1]
    dout_pad = layers[-1][0].shape[1]

    # Only very large, ragged batches get padded (so they can be tiled); the
    # common case feeds x to the kernel at its natural shape (no pad op).
    batch = b_true
    if batch % _SUBLANE != 0 and batch > 2048:
        batch = _round_up(batch, _SUBLANE)
        x = jnp.pad(x, ((0, batch - b_true), (0, 0)))

    tb, n_tiles = _choose_batch_tile(batch)

    in_specs = [pl.BlockSpec((tb, din), lambda i: (i, 0))]
    flat_inputs = [x]
    flops = 0
    param_bytes = 0
    for w, b in layers:
        # Grid-invariant blocks: single-buffer (no pipelining benefit).
        in_specs.append(pl.BlockSpec(w.shape, lambda i: (0, 0),
                                     pipeline_mode=pl.Buffered(1)))
        in_specs.append(pl.BlockSpec(b.shape, lambda i: (0, 0),
                                     pipeline_mode=pl.Buffered(1)))
        flat_inputs += [w, b]
        flops += 2 * batch * w.shape[0] * w.shape[1] + 2 * batch * w.shape[1]
        param_bytes += w.size * w.dtype.itemsize + b.size * b.dtype.itemsize
    bytes_accessed = batch * din * 4 + batch * dout_pad * 4 + param_bytes

    # Explicit VMEM budget: double-buffered x/out tiles, single-buffered
    # params, per-layer f32+bf16 copies of the running activation, 2x headroom.
    max_width = max([din] + [w.shape[1] for w, _ in layers])
    working = (2 * tb * (din + dout_pad) * 4 + param_bytes
               + num_layers * tb * max_width * 6)
    vmem_limit = int(min(max(2 * working, 8 << 20), 64 << 20))

    kernel = functools.partial(_fused_mlp_kernel, num_layers=num_layers)

    out_pad = pl.pallas_call(
        kernel,
        out_shape=jax.ShapeDtypeStruct((batch, dout_pad), jnp.float32),
        grid=(n_tiles,),
        in_specs=in_specs,
        out_specs=pl.BlockSpec((tb, dout_pad), lambda i: (i, 0)),
        compiler_params=pltpu.CompilerParams(
            dimension_semantics=("parallel",),
            vmem_limit_bytes=vmem_limit),
        cost_estimate=pl.CostEstimate(
            flops=flops, transcendentals=0, bytes_accessed=bytes_accessed),
    )(*flat_inputs)

    out = out_pad
    if batch != b_true:
        out = out[:b_true]
    if dout_pad != dout_true:
        out = out[:, :dout_true]      # padded lanes are exact zeros
    return out


if __name__ == "__main__":
    key = jax.random.PRNGKey(0)
    k_x, k_p = jax.random.split(key)

    batch, state_dim = 2, 16
    hidden_units = (64, 64)   # FCBody default

    x = jax.random.normal(k_x, (batch, state_dim), dtype=jnp.float32)
    params = init_fc_body_params(k_p, state_dim, hidden_units)

    out = jax.block_until_ready(fc_body_forward(x, params))

    # Reference 1: identical precision recipe (bf16 MXU inputs, f32 accum).
    h_bf = x.astype(jnp.float32).astype(jnp.bfloat16)
    ref_f32 = None
    for w, b in params["layers"]:
        y = jnp.dot(h_bf, w, preferred_element_type=jnp.float32) + b
        ref_f32 = jnp.maximum(y, 0.0)
        h_bf = ref_f32.astype(jnp.bfloat16)
    ref_bf = ref_f32[:, :hidden_units[-1]]

    # Reference 2: pure-f32 math on unpadded slices (module semantics).
    dims = params["dims"]
    ref32 = x.astype(jnp.float32)
    for (d_in, d_out), (w, b) in zip(zip(dims[:-1], dims[1:]),
                                     params["layers"]):
        kin = min(d_in, w.shape[0])
        ref32 = jnp.maximum(
            ref32[:, :kin] @ w[:kin, :d_out].astype(jnp.float32)
            + b[:, :d_out], 0.0)

    assert out.shape == (batch, hidden_units[-1])
    assert out.dtype == jnp.float32
    assert jnp.allclose(out, ref_bf, atol=1e-4, rtol=1e-4)
    assert jnp.allclose(out, ref32, atol=5e-2, rtol=5e-2)

    print("KERNEL_OK")
</pallas_src>

<mosaic_0001>
module attributes {stable_mosaic.version = 11 : i64} {
  func.func @_fused_mlp_kernel(%arg0: i32, %arg1: memref<2x16xf32, #tpu.memory_space<vmem>>, %arg2: memref<16x128xbf16, #tpu.memory_space<vmem>>, %arg3: memref<1x128xf32, #tpu.memory_space<vmem>>, %arg4: memref<128x128xbf16, #tpu.memory_space<vmem>>, %arg5: memref<1x128xf32, #tpu.memory_space<vmem>>, %arg6: memref<2x128xf32, #tpu.memory_space<vmem>>) attributes {dimension_semantics = [#tpu.dimension_semantics<parallel>], iteration_bounds = array<i64: 1>, scalar_prefetch = 0 : i64, scratch_operands = 0 : i64, tpu.core_type = #tpu.core_type<tc>, window_params = [{transform_indices = @transform_0, window_bounds = array<i64: 2, 16>}, {pipeline_mode = #tpu.pipeline_mode<synchronous>, transform_indices = @transform_1, window_bounds = array<i64: 16, 128>}, {pipeline_mode = #tpu.pipeline_mode<synchronous>, transform_indices = @transform_2, window_bounds = array<i64: 1, 128>}, {pipeline_mode = #tpu.pipeline_mode<synchronous>, transform_indices = @transform_3, window_bounds = array<i64: 128, 128>}, {pipeline_mode = #tpu.pipeline_mode<synchronous>, transform_indices = @transform_4, window_bounds = array<i64: 1, 128>}, {transform_indices = @transform_5, window_bounds = array<i64: 2, 128>}]} {
    %c0 = arith.constant 0 : index
    %c0_0 = arith.constant 0 : index
    %0 = vector.load %arg1[%c0, %c0_0] : memref<2x16xf32, #tpu.memory_space<vmem>>, vector<2x16xf32>
    %1 = arith.truncf %0 : vector<2x16xf32> to vector<2x16xbf16>
    %c0_1 = arith.constant 0 : index
    %c0_2 = arith.constant 0 : index
    %2 = vector.load %arg2[%c0_1, %c0_2] : memref<16x128xbf16, #tpu.memory_space<vmem>>, vector<16x128xbf16>
    %cst = arith.constant dense<0.000000e+00> : vector<2x128xf32>
    %3 = tpu.matmul %1, %2, %cst {dimension_numbers = #tpu.dot_dimension_numbers<[1], [0], [0], [1], [0, 0, 1, 1], [], []>} : vector<2x16xbf16>, vector<16x128xbf16>, vector<2x128xf32> -> vector<2x128xf32>
    %c0_3 = arith.constant 0 : index
    %c0_4 = arith.constant 0 : index
    %4 = vector.load %arg3[%c0_3, %c0_4] : memref<1x128xf32, #tpu.memory_space<vmem>>, vector<1x128xf32>
    %5 = vector.broadcast %4 : vector<1x128xf32> to vector<2x128xf32>
    %6 = arith.addf %3, %5 : vector<2x128xf32>
    %cst_5 = arith.constant 0.000000e+00 : f32
    %7 = vector.broadcast %cst_5 : f32 to vector<2x128xf32>
    %8 = arith.maximumf %6, %7 : vector<2x128xf32>
    %9 = arith.truncf %8 : vector<2x128xf32> to vector<2x128xbf16>
    %c0_6 = arith.constant 0 : index
    %c0_7 = arith.constant 0 : index
    %10 = vector.load %arg4[%c0_6, %c0_7] : memref<128x128xbf16, #tpu.memory_space<vmem>>, vector<128x128xbf16>
    %cst_8 = arith.constant dense<0.000000e+00> : vector<2x128xf32>
    %11 = tpu.matmul %9, %10, %cst_8 {dimension_numbers = #tpu.dot_dimension_numbers<[1], [0], [0], [1], [0, 0, 1, 1], [], []>} : vector<2x128xbf16>, vector<128x128xbf16>, vector<2x128xf32> -> vector<2x128xf32>
    %c0_9 = arith.constant 0 : index
    %c0_10 = arith.constant 0 : index
    %12 = vector.load %arg5[%c0_9, %c0_10] : memref<1x128xf32, #tpu.memory_space<vmem>>, vector<1x128xf32>
    %13 = vector.broadcast %12 : vector<1x128xf32> to vector<2x128xf32>
    %14 = arith.addf %11, %13 : vector<2x128xf32>
    %cst_11 = arith.constant 0.000000e+00 : f32
    %15 = vector.broadcast %cst_11 : f32 to vector<2x128xf32>
    %16 = arith.maximumf %14, %15 : vector<2x128xf32>
    %c0_12 = arith.constant 0 : index
    %c0_13 = arith.constant 0 : index
    %17 = vector.load %arg6[%c0_12, %c0_13] : memref<2x128xf32, #tpu.memory_space<vmem>>, vector<2x128xf32>
    tpu.vector_store %arg6[%c0_12, %c0_13], %16 {strides = array<i32>} : memref<2x128xf32, #tpu.memory_space<vmem>>, vector<2x128xf32>,
    return
  }
  func.func @transform_0(%arg0: i32) -> (i32, i32) {
    %c0_i32 = arith.constant 0 : i32
    %c0_i32_0 = arith.constant 0 : i32
    return %arg0, %c0_i32 : i32, i32
  }
  func.func @transform_1(%arg0: i32) -> (i32, i32) {
    %c0_i32 = arith.constant 0 : i32
    %c0_i32_0 = arith.constant 0 : i32
    %c0_i32_1 = arith.constant 0 : i32
    return %c0_i32, %c0_i32_0 : i32, i32
  }
  func.func @transform_2(%arg0: i32) -> (i32, i32) {
    %c0_i32 = arith.constant 0 : i32
    %c0_i32_0 = arith.constant 0 : i32
    %c0_i32_1 = arith.constant 0 : i32
    return %c0_i32, %c0_i32_0 : i32, i32
  }
  func.func @transform_3(%arg0: i32) -> (i32, i32) {
    %c0_i32 = arith.constant 0 : i32
    %c0_i32_0 = arith.constant 0 : i32
    %c0_i32_1 = arith.constant 0 : i32
    return %c0_i32, %c0_i32_0 : i32, i32
  }
  func.func @transform_4(%arg0: i32) -> (i32, i32) {
    %c0_i32 = arith.constant 0 : i32
    %c0_i32_0 = arith.constant 0 : i32
    %c0_i32_1 = arith.constant 0 : i32
    return %c0_i32, %c0_i32_0 : i32, i32
  }
  func.func @transform_5(%arg0: i32) -> (i32, i32) {
    %c0_i32 = arith.constant 0 : i32
    %c0_i32_0 = arith.constant 0 : i32
    return %arg0, %c0_i32 : i32, i32
  }
}

</mosaic_0001>

<bundles_post_ra>
// kernel: tpu_custom_call.1
= control target key start
LH: loop header
LB: loop body
LE: loop exit
PB: predicated region body
PF: predicated region fallthrough
CT: control target
= control target key end

     0   :  { %10 = vsyncpa [#allocation3], 0  ;;  %s511_s0 = inlined_call_operand.hbm [shape: f32[2,16], index: 0, kind: input, shape index: {}]   ;;  %s512_s1 = inlined_call_operand.hbm [shape: bf16[16,128], index: 1, kind: input, shape index: {}]   ;;  %s513_s2 = inlined_call_operand.vmem [shape: f32[1,128], index: 2, kind: input, shape index: {}]   ;;  %s514_s3 = inlined_call_operand.hbm [shape: bf16[128,128], index: 3, kind: input, shape index: {}]   ;;  %s515_s4 = inlined_call_operand.vmem [shape: f32[1,128], index: 4, kind: input, shape index: {}]   ;;  %s516_s5 = inlined_call_operand.hbm [shape: f32[2,128], index: 5, kind: output, shape index: {}]  }
   0x1   :  { %11 = vsyncpa [#allocation6], 0 }
   0x2   :  { %12 = vsyncpa [#allocation4], 0  ;;  %s413_s18 = smov [#allocation5]   ;;  %s319_s22 = scalar_lea.hbm %s512_s1, 128 }
   0x3   :  { %s28_s19 = sshll.u32 %s413_s18, 4  ;;  %p320_p0 = scmp.ne.s32.totalorder %s512_s1, %s319_s22  ;;  %s29_s19 = int_to_ptr.vmem [resolvable:$true] %s28_s19 }
   0x4   :  { %p323_p1 = scmp.lt.u32.totalorder %s319_s22, %s512_s1 }
   0x6   :  { %p325_p2 = pnand %p323_p1, %p320_p0 }
   0x8   :  { %328 = shalt.err (!%p325_p2)
}
   0x9   :  { %s329_s27 = scalar_lea.vmem %s29_s19, 128  ;;  %p334_p4 = scmp.lt.s32.totalorder %s29_s19, %s29_s19 }
   0xa   :  { %p330_p3 = scmp.ne.s32.totalorder %s29_s19, %s329_s27  ;;  %p335_p5 = scmp.lt.s32.totalorder %s329_s27, %s329_s27 }
   0xc   :  { %p336_p6 = por %p335_p5, %p334_p4 }
   0xe   :  { %p337_p7 = pnand %p336_p6, %p330_p3 }
  0x10   :  { %340 = shalt.err (!%p337_p7)
}
  0x11   :  { %s414_s28 = smov 64   ;;  %s415_s29 = smov 4  }
  0x12   :  { %34 = dma.hbm_to_vmem [thread:$0]  %s512_s1, 128, %s29_s19, [#allocation6], %s414_s28, %s414_s28, %s415_s29  }
  0x13   :  { %s416_s7 = smov [#allocation2]   ;;  %s417_s9 = smov [#allocation7]  }
  0x14   :  { %s19_s8 = sshll.u32 %s416_s7, 4  ;;  %s42_s10 = sshll.u32 %s417_s9, 4  ;;  %s20_s8 = int_to_ptr.vmem [resolvable:$true] %s19_s8  ;;  %s43_s10 = int_to_ptr.vmem [resolvable:$true] %s42_s10 }
  0x15   :  { %s341_s13 = scalar_lea.hbm %s511_s0, 32 }
  0x16   :  { %p342_p8 = scmp.ne.s32.totalorder %s511_s0, %s341_s13  ;;  %p345_p9 = scmp.lt.u32.totalorder %s341_s13, %s511_s0 }
  0x18   :  { %p347_p10 = pnand %p345_p9, %p342_p8 }
  0x1a   :  { %350 = shalt.err (!%p347_p10)
}
  0x1b   :  { %s351_s1 = scalar_lea.vmem %s20_s8, 32  ;;  %p356_p12 = scmp.lt.s32.totalorder %s20_s8, %s20_s8 }
  0x1c   :  { %p352_p11 = scmp.ne.s32.totalorder %s20_s8, %s351_s1  ;;  %p357_p13 = scmp.lt.s32.totalorder %s351_s1, %s351_s1 }
  0x1e   :  { %p358_p0 = por %p357_p13, %p356_p12 }
  0x20   :  { %p359_p1 = pnand %p358_p0, %p352_p11 }
  0x22   :  { %362 = shalt.err (!%p359_p1)
}
  0x23   :  { %22 = dma.hbm_to_vmem [thread:$0]  %s511_s0, 32, %s20_s8, [#allocation3]  }
  0x24   :  { %s363_s22 = scalar_lea.hbm %s514_s3, 1024 }
  0x25   :  { %p364_p2 = scmp.ne.s32.totalorder %s514_s3, %s363_s22  ;;  %p367_p3 = scmp.lt.u32.totalorder %s363_s22, %s514_s3 }
  0x27   :  { %p369_p4 = pnand %p367_p3, %p364_p2 }
  0x29   :  { %372 = shalt.err (!%p369_p4)
}
  0x2a   :  { %s373_s27 = scalar_lea.vmem %s43_s10, 1024  ;;  %p378_p6 = scmp.lt.s32.totalorder %s43_s10, %s43_s10 }
  0x2b   :  { %p374_p5 = scmp.ne.s32.totalorder %s43_s10, %s373_s27  ;;  %p379_p7 = scmp.lt.s32.totalorder %s373_s27, %s373_s27 }
  0x2d   :  { %p380_p8 = por %p379_p7, %p378_p6 }
  0x2f   :  { %p381_p9 = pnand %p380_p8, %p374_p5 }
  0x31   :  { %384 = shalt.err (!%p381_p9)
}
  0x32   :  { %48 = dma.hbm_to_vmem [thread:$0]  %s514_s3, 1024, %s43_s10, [#allocation6], %s414_s28, %s414_s28, %s415_s29  }
  0x33   :  { %407 = dma.done.wait [#allocation3], 32  }
  0x34   :  { %408 = vsyncadd [#allocation3], 4294967264 }
  0x35   :  { %409 = dma.done.wait [#allocation6], 1152  }
  0x36   :  { %410 = vsyncadd [#allocation6], 4294966144  ;;  %v418_v0 = vmov 0.0   ;;  %vm419_vm0 = vmmov 0   ;;  %v310_v1 = vld [vmem:[#allocation5] sm:$0xff]   ;;  %vm78_vm1 = vcmask 130048  }
  0x37   :  { %276 = vmatprep.subr.bf16.mxu0 %v418_v0  ;;  %278 = vmatprep.mubr.msk.bf16.mxu0 %vm419_vm0, %v418_v0  ;;  %v61_v2 = vld [vmem:[#allocation2] sm:$0x3]  ;;  %v311_v4 = vld [vmem:[#allocation7] sm:$0xff]   ;;  %v312_v5 = vld [vmem:[#allocation7 + $0x8] sm:$0xff]   ;;  %s420_s7 = smov [#allocation8]  }
  0x38   :  { %282 = vmatprep.subr.bf16.mxu1 %v418_v0  ;;  %298 = vmatprep.mubr.msk.bf16.mxu1 %vm419_vm0, %v418_v0  ;;  %v62_v3 = vpack.c.bf16 %v61_v2, %v61_v2  ;;  %v313_v6 = vld [vmem:[#allocation7 + $0x10] sm:$0xff]   ;;  %v314_v7 = vld [vmem:[#allocation7 + $0x18] sm:$0xff]   ;;  %v315_v8 = vld [vmem:[#allocation7 + $0x20] sm:$0xff]   ;;  %s243_s8 = sshll.u32 %s420_s7, 4  ;;  %s244_s8 = int_to_ptr.vmem [resolvable:$true] %s243_s8 }
  0x39   :  { %277 = vmatpush3.bf16.msra.mxu0 %v310_v1  ;;  %283 = vmatpush3.bf16.msra.mxu1 %v311_v4  ;;  %v316_v9 = vld [vmem:[#allocation7 + $0x28] sm:$0xff]   ;;  %v317_v10 = vld [vmem:[#allocation7 + $0x30] sm:$0xff]   ;;  %v318_v11 = vld [vmem:[#allocation7 + $0x38] sm:$0xff]   ;;  %p390_p11 = scmp.lt.s32.totalorder %s244_s8, %s244_s8 }
  0x3a   :  { %284 = vmatprep.subr.bf16.mxu1 %v418_v0  ;;  %v253_v12 = vld [vmem:[%s513_s2] ss:$0 sm:$0xff]  ;;  %s385_s2 = scalar_lea.vmem %s244_s8, 32 }
  0x3b   :  { %v256_v20 = vld [vmem:[%s515_s4] ss:$0 sm:$0xff]  ;;  %p386_p10 = scmp.ne.s32.totalorder %s244_s8, %s385_s2  ;;  %p391_p12 = scmp.lt.s32.totalorder %s385_s2, %s385_s2 }
  0x3c   :  { %279 = vmatmul.mubr.msk.bf16.vlgmr.msra.gmra.mrb[0].mxu0 %vm78_vm1, %v62_v3 }
  0x3d   :  { %285 = vmatpush3.bf16.msra.mxu1 %v312_v5  ;;  %p392_p13 = por %p391_p12, %p390_p11 }
  0x3e   :  { %286 = vmatprep.subr.bf16.mxu1 %v418_v0 }
  0x3f   :  { %p393_p0 = pnand %p392_p13, %p386_p10 }
  0x41   :  { %287 = vmatpush3.bf16.msra.mxu1 %v313_v6 }
  0x42   :  { %288 = vmatprep.subr.bf16.mxu1 %v418_v0 }
  0x45   :  { %289 = vmatpush3.bf16.msra.mxu1 %v314_v7 }
  0x46   :  { %290 = vmatprep.subr.bf16.mxu1 %v418_v0 }
  0x49   :  { %291 = vmatpush3.bf16.msra.mxu1 %v315_v8 }
  0x4a   :  { %292 = vmatprep.subr.bf16.mxu1 %v418_v0 }
  0x4d   :  { %293 = vmatpush3.bf16.msra.mxu1 %v316_v9 }
  0x4e   :  { %294 = vmatprep.subr.bf16.mxu1 %v418_v0 }
  0x51   :  { %295 = vmatpush3.bf16.msra.mxu1 %v317_v10 }
  0x52   :  { %296 = vmatprep.subr.bf16.mxu1 %v418_v0 }
  0x55   :  { %297 = vmatpush3.bf16.msra.mxu1 %v318_v11 }
 0x10f   :  { %v116_v13 = vpop.f32.mrb[0].mxu0 }
 0x110   :  { %v117_v14 = vadd.f32 %v253_v12, %v116_v13  ;;  %v280_v15 = vpop.f32.mrb[1].mxu0 }
 0x111   :  { %v119_v16 = vpop.f32.mrb[2].mxu0 }
 0x112   :  { %v122_v17 = vmax.f32 %v117_v14, 0.0  ;;  %v281_v18 = vpop.f32.mrb[3].mxu0 }
 0x114   :  { %v123_v19 = vpack.c.bf16 %v122_v17, %v122_v17 }
 0x116   :  { %299 = vmatmul.mubr.bf16.vlgmr.msra.gmra.mrb[0].mxu1 %v123_v19 }
 0x1e9   :  { %v229_v21 = vpop.f32.mrb[0].mxu1 }
 0x1ea   :  { %v230_v22 = vadd.f32 %v256_v20, %v229_v21  ;;  %v300_v23 = vpop.f32.mrb[1].mxu1 }
 0x1eb   :  { %v232_v24 = vpop.f32.mrb[2].mxu1 }
 0x1ec   :  { %v235_v25 = vmax.f32 %v230_v22, 0.0  ;;  %v301_v26 = vpop.f32.mrb[3].mxu1 }
 0x1ee   :  { %236 = vst [vmem:[#allocation8] sm:$0x3] %v235_v25 }
 0x1ef   :  { %396 = shalt.err (!%p393_p0)
}
 0x1f0   :  { %s397_s4 = scalar_lea.hbm %s516_s5, 32 }
 0x1f1   :  { %p398_p1 = scmp.ne.s32.totalorder %s516_s5, %s397_s4  ;;  %p401_p2 = scmp.lt.u32.totalorder %s397_s4, %s516_s5 }
 0x1f3   :  { %p403_p3 = pnand %p401_p2, %p398_p1 }
 0x1f5   :  { %406 = shalt.err (!%p403_p3)
}
 0x1f6   :  { %246 = dma.vmem_to_hbm [thread:$0]  %s244_s8, 32, %s516_s5, [#allocation4]  }
 0x1f7   :  { %411 = dma.done.wait [#allocation4], 32  }
 0x1f8   :  { %412 = vsyncadd [#allocation4], 4294967264 }
 0x1f9   :  { %250 = vsyncpa [#allocation3], 1 }
 0x1fa   :  { %251 = vsyncpa [#allocation6], 1 }
 0x1fb   :  { %252 = vsyncpa [#allocation4], 1 }

</bundles_post_ra>
